<compile_context>
chip_gen: v7x
topology: tpu7x:2x2x1
jax: 0.10.0
libtpu: 0.0.40
codegen_flags: <defaults>
</compile_context>

<pallas_src>
import math
import numpy as np
import jax
import jax.numpy as jnp
from jax.experimental import pallas as pl
from jax.experimental.pallas import tpu as pltpu

_LANES = 128

# Layer table: (fan_in, fan_out, output column offset in the 128-lane slab).
# Slot 3 is the fused mean|logvar head; its output is landed at lanes 16:20 so
# the kernel can merge it with x_hat (lanes 0:10) with a single add.
_LAYERS = (
    (10, 100, 0),    # enc1
    (100, 50, 0),    # enc2
    (50, 25, 0),     # enc3
    (25, 4, 16),     # head: mean -> lanes 16:18, logvar -> lanes 18:20
    (2, 25, 0),      # dec1 (computed on the VPU, K=2)
    (25, 50, 0),     # dec2
    (50, 100, 0),    # dec3
    (100, 10, 0),    # dec4
)


def _round_up(n, m):
    return ((n + m - 1) // m) * m


# Tight row packing: slot i occupies rows [off, off + round_up(fan_in+1, 8)).
#   rows off : off+fan_in -> W (fan_in, out) zero-padded to 128 lanes
#   row  off+fan_in       -> bias (zero-padded to 128 lanes)
#   remaining rows        -> exactly zero (invariant relied on by the merges)
_SLOT_OFFS = []
_off = 0
for _fi, _fo, _co in _LAYERS:
    _SLOT_OFFS.append(_off)
    _off += _round_up(_fi + 1, 8)
_TOTAL_ROWS = _off   # 408 rows -> ~204 KB f32 (vs 557 KB in the padded-to-128 layout)


def _vae_kernel(xin_ref, p_ref, out_ref):
    # xin_ref: (TB, 128)  x in lanes 0:10, eps in lanes 16:18, rest zero
    # p_ref:   (408, 128) tightly packed weights + biases (layout above)
    # out_ref: (TB, 128)  x_hat lanes 0:10, mean lanes 16:18, logvar lanes 18:20
    xin = xin_ref[...]

    def dense(h, slot, relu):
        fi, _fo, _co = _LAYERS[slot]
        off = _SLOT_OFFS[slot]
        kp = _round_up(fi, 8)
        # Rows fi:kp of the slot are [bias, 0, ...]; the matching lanes of h are
        # exactly zero, so including them keeps the slice 8-aligned at no cost.
        w = p_ref[off:off + kp, :]                      # (kp, 128)
        b = p_ref[off + fi:off + fi + 1, :]             # (1, 128)
        y = jnp.dot(h[:, :kp], w, preferred_element_type=jnp.float32) + b
        return jnp.maximum(y, 0.0) if relu else y

    # ---- encoder: 10 -> 100 -> 50 -> 25 (ReLU each) ----
    # The eps lanes (16:18) are excluded by the h[:, :16] slice of layer 0.
    h = dense(xin, 0, True)
    h = dense(h, 1, True)
    h = dense(h, 2, True)

    # ---- fused mean|logvar head, landed directly at lanes 16:20 ----
    ho = dense(h, 3, False)
    mean = ho[:, 16:18]
    logvar = ho[:, 18:20]

    # ---- reparameterize (eps supplied as input lanes 16:18 for determinism) ----
    eps = xin[:, 16:18]
    z = mean + eps * jnp.exp(0.5 * logvar)              # (TB, 2)

    # ---- decoder layer 1 (K=2): two VPU broadcast-FMAs instead of an MXU pass ----
    s4 = p_ref[_SLOT_OFFS[4]:_SLOT_OFFS[4] + 8, :]      # aligned (8,128) slot read
    d = jnp.maximum(z[:, 0:1] * s4[0:1, :] + z[:, 1:2] * s4[1:2, :] + s4[2:3, :], 0.0)

    # ---- rest of decoder: 25 -> 50 -> 100 -> 10 ----
    d = dense(d, 5, True)
    d = dense(d, 6, True)
    xhat = dense(d, 7, False)

    # Single lane-dense unmasked store: x_hat occupies lanes 0:10, ho occupies
    # lanes 16:20, and both are exactly zero everywhere else (zero padded
    # weight columns AND zero padded bias lanes), so one add merges them.
    out_ref[...] = xhat + ho


def _build_call(TB, Bp, grid, single_buffer_weights):
    w_kwargs = {"pipeline_mode": pl.Buffered(1)} if single_buffer_weights else {}
    return pl.pallas_call(
        _vae_kernel,
        out_shape=jax.ShapeDtypeStruct((Bp, _LANES), jnp.float32),
        grid=grid,
        in_specs=[
            # activations: tiled over batch (pipelined by Pallas)
            pl.BlockSpec((TB, _LANES), lambda i: (i, 0)),
            # packed weights: one block, resident across all batch tiles
            pl.BlockSpec((_TOTAL_ROWS, _LANES), lambda i: (0, 0), **w_kwargs),
        ],
        out_specs=pl.BlockSpec((TB, _LANES), lambda i: (i, 0)),
        compiler_params=pltpu.CompilerParams(
            dimension_semantics=("parallel",),
            vmem_limit_bytes=32 * 1024 * 1024,
        ),
    )


def vae_forward(x, eps, param_slab, *, batch_tile=1024):
    """x: (B, 10) f32, eps: (B, 2) f32, param_slab: (408, 128) f32 packed params.

    batch_tile=1024 is safe on all generations; on v6e/v7x it can be raised to
    2048-4096 (raise vmem_limit_bytes accordingly) for large-B throughput.
    """
    B = x.shape[0]
    # Aim for >= 2 batch tiles whenever B allows it so the "parallel" batch axis
    # can shard across v7x's two TensorCores; at B=8 this degenerates to grid=(1,).
    TB = max(8, min(batch_tile, _round_up(-(-B // 2), 8)))
    Bp = _round_up(B, TB)
    grid = (Bp // TB,)

    # Single lane-dense input slab: x -> lanes 0:10, eps -> lanes 16:18.
    xin = jnp.zeros((Bp, _LANES), jnp.float32)
    xin = xin.at[:B, 0:10].set(x.astype(jnp.float32))
    xin = xin.at[:B, 16:18].set(eps.astype(jnp.float32))

    try:
        out = _build_call(TB, Bp, grid, True)(xin, param_slab)
    except Exception:
        # pl.Buffered(1) (single-buffered resident weights) unsupported on this
        # jax version -> fall back to default double buffering (same semantics).
        out = _build_call(TB, Bp, grid, False)(xin, param_slab)

    x_hat = out[:B, 0:10]
    mean = out[:B, 16:18]
    logvar = out[:B, 18:20]
    return x_hat, mean, logvar


# ----------------------------- parameter setup -----------------------------

def init_linear(key, fan_in, fan_out):
    """PyTorch-style init: U(-1/sqrt(fan_in), 1/sqrt(fan_in)). W stored (in, out)."""
    kw, kb = jax.random.split(key)
    bound = 1.0 / math.sqrt(fan_in)
    w = jax.random.uniform(kw, (fan_in, fan_out), jnp.float32, -bound, bound)
    b = jax.random.uniform(kb, (fan_out,), jnp.float32, -bound, bound)
    return w, b


def build_params(key):
    layer_dims = [
        (10, 100), (100, 50), (50, 25),            # encoder
        (25, 2), (25, 2),                          # mean, logvar
        (2, 25), (25, 50), (50, 100), (100, 10),   # decoder
    ]
    keys = jax.random.split(key, len(layer_dims))
    return [init_linear(k, fi, fo) for k, (fi, fo) in zip(keys, layer_dims)]


def pack_params(params):
    """Pack the 9 (W, b) layers (mean|logvar fused) into one (408, 128) f32 slab."""
    (e1, e2, e3, mhead, lhead, d1, d2, d3, d4) = params
    head_w = jnp.concatenate([mhead[0], lhead[0]], axis=1)            # (25, 4)
    head_b = jnp.concatenate([jnp.ravel(mhead[1]), jnp.ravel(lhead[1])])
    layers = [e1, e2, e3, (head_w, head_b), d1, d2, d3, d4]
    slab = np.zeros((_TOTAL_ROWS, _LANES), np.float32)   # padding stays exactly 0
    for (w, b), off, (fi, fo, co) in zip(layers, _SLOT_OFFS, _LAYERS):
        w = np.asarray(w, np.float32)
        b = np.asarray(b, np.float32).reshape(-1)
        slab[off:off + fi, co:co + fo] = w
        slab[off + fi, co:co + fo] = b
    return jnp.asarray(slab)


# ----------------------------- reference / test -----------------------------

def _ref_dense(x, w, b, relu=False):
    y = jnp.dot(x, w, precision=jax.lax.Precision.HIGHEST) + b
    return jax.nn.relu(y) if relu else y


def vae_reference(x, eps, params):
    (e1w, e1b), (e2w, e2b), (e3w, e3b), (mw, mb), (lw, lb), \
        (d1w, d1b), (d2w, d2b), (d3w, d3b), (d4w, d4b) = params
    h = _ref_dense(x, e1w, e1b, True)
    h = _ref_dense(h, e2w, e2b, True)
    h = _ref_dense(h, e3w, e3b, True)
    mean = _ref_dense(h, mw, mb)
    logvar = _ref_dense(h, lw, lb)
    z = mean + eps * jnp.exp(0.5 * logvar)
    d = _ref_dense(z, d1w, d1b, True)
    d = _ref_dense(d, d2w, d2b, True)
    d = _ref_dense(d, d3w, d3b, True)
    xhat = _ref_dense(d, d4w, d4b)
    return xhat, mean, logvar


if __name__ == "__main__":
    key = jax.random.PRNGKey(0)
    k_params, k_x, k_eps = jax.random.split(key, 3)

    B = 8  # small batch, multiple of 8 sublanes
    params = build_params(k_params)
    param_slab = pack_params(params)
    x = jax.random.normal(k_x, (B, 10), jnp.float32)
    # eps plays the role of torch.randn_like(std) — drawn host-side for determinism.
    # TODO(synk): could instead draw eps in-kernel with pltpu.prng_seed/prng_random_bits.
    eps = jax.random.normal(k_eps, (B, 2), jnp.float32)

    x_hat, mean, logvar = vae_forward(x, eps, param_slab)
    jax.block_until_ready((x_hat, mean, logvar))

    # sanity check against pure-JAX reference
    r_xhat, r_mean, r_logvar = vae_reference(x, eps, params)
    assert jnp.allclose(x_hat, r_xhat, atol=1e-5, rtol=1e-5), "x_hat mismatch"
    assert jnp.allclose(mean, r_mean, atol=1e-5, rtol=1e-5), "mean mismatch"
    assert jnp.allclose(logvar, r_logvar, atol=1e-5, rtol=1e-5), "logvar mismatch"

    print("KERNEL_OK")
</pallas_src>

<mosaic_0001>
module attributes {stable_mosaic.version = 11 : i64} {
  func.func @_vae_kernel(%arg0: i32, %arg1: memref<8x128xf32, #tpu.memory_space<vmem>>, %arg2: memref<408x128xf32, #tpu.memory_space<vmem>>, %arg3: memref<8x128xf32, #tpu.memory_space<vmem>>) attributes {dimension_semantics = [#tpu.dimension_semantics<parallel>], iteration_bounds = array<i64: 1>, scalar_prefetch = 0 : i64, scratch_operands = 0 : i64, tpu.core_type = #tpu.core_type<tc>, window_params = [{transform_indices = @transform_0, window_bounds = array<i64: 8, 128>}, {pipeline_mode = #tpu.pipeline_mode<synchronous>, transform_indices = @transform_1, window_bounds = array<i64: 408, 128>}, {transform_indices = @transform_2, window_bounds = array<i64: 8, 128>}]} {
    %c0 = arith.constant 0 : index
    %c0_0 = arith.constant 0 : index
    %0 = vector.load %arg1[%c0, %c0_0] : memref<8x128xf32, #tpu.memory_space<vmem>>, vector<8x128xf32>
    %c0_1 = arith.constant 0 : index
    %c0_2 = arith.constant 0 : index
    %1 = vector.load %arg2[%c0_1, %c0_2] : memref<408x128xf32, #tpu.memory_space<vmem>>, vector<16x128xf32>
    %c10 = arith.constant 10 : index
    %c0_3 = arith.constant 0 : index
    %2 = vector.load %arg2[%c10, %c0_3] : memref<408x128xf32, #tpu.memory_space<vmem>>, vector<1x128xf32>
    %3 = vector.extract_strided_slice %0 {offsets = [0, 0], sizes = [8, 16], strides = [1, 1]} : vector<8x128xf32> to vector<8x16xf32>
    %cst = arith.constant dense<0.000000e+00> : vector<8x128xf32>
    %4 = tpu.matmul %3, %1, %cst {dimension_numbers = #tpu.dot_dimension_numbers<[1], [0], [0], [1], [0, 0, 1, 1], [], []>} : vector<8x16xf32>, vector<16x128xf32>, vector<8x128xf32> -> vector<8x128xf32>
    %5 = vector.broadcast %2 : vector<1x128xf32> to vector<8x128xf32>
    %6 = arith.addf %4, %5 : vector<8x128xf32>
    %cst_4 = arith.constant 0.000000e+00 : f32
    %7 = vector.broadcast %cst_4 : f32 to vector<8x128xf32>
    %8 = arith.maximumf %6, %7 : vector<8x128xf32>
    %c16 = arith.constant 16 : index
    %c0_5 = arith.constant 0 : index
    %9 = vector.load %arg2[%c16, %c0_5] : memref<408x128xf32, #tpu.memory_space<vmem>>, vector<104x128xf32>
    %c116 = arith.constant 116 : index
    %c0_6 = arith.constant 0 : index
    %10 = vector.load %arg2[%c116, %c0_6] : memref<408x128xf32, #tpu.memory_space<vmem>>, vector<1x128xf32>
    %11 = vector.extract_strided_slice %8 {offsets = [0, 0], sizes = [8, 104], strides = [1, 1]} : vector<8x128xf32> to vector<8x104xf32>
    %cst_7 = arith.constant dense<0.000000e+00> : vector<8x128xf32>
    %12 = tpu.matmul %11, %9, %cst_7 {dimension_numbers = #tpu.dot_dimension_numbers<[1], [0], [0], [1], [0, 0, 1, 1], [], []>} : vector<8x104xf32>, vector<104x128xf32>, vector<8x128xf32> -> vector<8x128xf32>
    %13 = vector.broadcast %10 : vector<1x128xf32> to vector<8x128xf32>
    %14 = arith.addf %12, %13 : vector<8x128xf32>
    %cst_8 = arith.constant 0.000000e+00 : f32
    %15 = vector.broadcast %cst_8 : f32 to vector<8x128xf32>
    %16 = arith.maximumf %14, %15 : vector<8x128xf32>
    %c120 = arith.constant 120 : index
    %c0_9 = arith.constant 0 : index
    %17 = vector.load %arg2[%c120, %c0_9] : memref<408x128xf32, #tpu.memory_space<vmem>>, vector<56x128xf32>
    %c170 = arith.constant 170 : index
    %c0_10 = arith.constant 0 : index
    %18 = vector.load %arg2[%c170, %c0_10] : memref<408x128xf32, #tpu.memory_space<vmem>>, vector<1x128xf32>
    %19 = vector.extract_strided_slice %16 {offsets = [0, 0], sizes = [8, 56], strides = [1, 1]} : vector<8x128xf32> to vector<8x56xf32>
    %cst_11 = arith.constant dense<0.000000e+00> : vector<8x128xf32>
    %20 = tpu.matmul %19, %17, %cst_11 {dimension_numbers = #tpu.dot_dimension_numbers<[1], [0], [0], [1], [0, 0, 1, 1], [], []>} : vector<8x56xf32>, vector<56x128xf32>, vector<8x128xf32> -> vector<8x128xf32>
    %21 = vector.broadcast %18 : vector<1x128xf32> to vector<8x128xf32>
    %22 = arith.addf %20, %21 : vector<8x128xf32>
    %cst_12 = arith.constant 0.000000e+00 : f32
    %23 = vector.broadcast %cst_12 : f32 to vector<8x128xf32>
    %24 = arith.maximumf %22, %23 : vector<8x128xf32>
    %c176 = arith.constant 176 : index
    %c0_13 = arith.constant 0 : index
    %25 = vector.load %arg2[%c176, %c0_13] : memref<408x128xf32, #tpu.memory_space<vmem>>, vector<32x128xf32>
    %c201 = arith.constant 201 : index
    %c0_14 = arith.constant 0 : index
    %26 = vector.load %arg2[%c201, %c0_14] : memref<408x128xf32, #tpu.memory_space<vmem>>, vector<1x128xf32>
    %27 = vector.extract_strided_slice %24 {offsets = [0, 0], sizes = [8, 32], strides = [1, 1]} : vector<8x128xf32> to vector<8x32xf32>
    %cst_15 = arith.constant dense<0.000000e+00> : vector<8x128xf32>
    %28 = tpu.matmul %27, %25, %cst_15 {dimension_numbers = #tpu.dot_dimension_numbers<[1], [0], [0], [1], [0, 0, 1, 1], [], []>} : vector<8x32xf32>, vector<32x128xf32>, vector<8x128xf32> -> vector<8x128xf32>
    %29 = vector.broadcast %26 : vector<1x128xf32> to vector<8x128xf32>
    %30 = arith.addf %28, %29 : vector<8x128xf32>
    %31 = vector.extract_strided_slice %30 {offsets = [0, 16], sizes = [8, 2], strides = [1, 1]} : vector<8x128xf32> to vector<8x2xf32>
    %32 = vector.extract_strided_slice %30 {offsets = [0, 18], sizes = [8, 2], strides = [1, 1]} : vector<8x128xf32> to vector<8x2xf32>
    %33 = vector.extract_strided_slice %0 {offsets = [0, 16], sizes = [8, 2], strides = [1, 1]} : vector<8x128xf32> to vector<8x2xf32>
    %cst_16 = arith.constant 5.000000e-01 : f32
    %34 = vector.broadcast %cst_16 : f32 to vector<8x2xf32>
    %35 = arith.mulf %34, %32 : vector<8x2xf32>
    %36 = math.exp %35 : vector<8x2xf32>
    %37 = arith.mulf %33, %36 : vector<8x2xf32>
    %38 = arith.addf %31, %37 : vector<8x2xf32>
    %c208 = arith.constant 208 : index
    %c0_17 = arith.constant 0 : index
    %39 = vector.load %arg2[%c208, %c0_17] : memref<408x128xf32, #tpu.memory_space<vmem>>, vector<8x128xf32>
    %40 = vector.extract_strided_slice %38 {offsets = [0, 0], sizes = [8, 1], strides = [1, 1]} : vector<8x2xf32> to vector<8x1xf32>
    %41 = vector.extract_strided_slice %39 {offsets = [0, 0], sizes = [1, 128], strides = [1, 1]} : vector<8x128xf32> to vector<1x128xf32>
    %42 = vector.broadcast %40 : vector<8x1xf32> to vector<8x128xf32>
    %43 = vector.broadcast %41 : vector<1x128xf32> to vector<8x128xf32>
    %44 = arith.mulf %42, %43 : vector<8x128xf32>
    %45 = vector.extract_strided_slice %38 {offsets = [0, 1], sizes = [8, 1], strides = [1, 1]} : vector<8x2xf32> to vector<8x1xf32>
    %46 = vector.extract_strided_slice %39 {offsets = [1, 0], sizes = [1, 128], strides = [1, 1]} : vector<8x128xf32> to vector<1x128xf32>
    %47 = vector.broadcast %45 : vector<8x1xf32> to vector<8x128xf32>
    %48 = vector.broadcast %46 : vector<1x128xf32> to vector<8x128xf32>
    %49 = arith.mulf %47, %48 : vector<8x128xf32>
    %50 = arith.addf %44, %49 : vector<8x128xf32>
    %51 = vector.extract_strided_slice %39 {offsets = [2, 0], sizes = [1, 128], strides = [1, 1]} : vector<8x128xf32> to vector<1x128xf32>
    %52 = vector.broadcast %51 : vector<1x128xf32> to vector<8x128xf32>
    %53 = arith.addf %50, %52 : vector<8x128xf32>
    %cst_18 = arith.constant 0.000000e+00 : f32
    %54 = vector.broadcast %cst_18 : f32 to vector<8x128xf32>
    %55 = arith.maximumf %53, %54 : vector<8x128xf32>
    %c216 = arith.constant 216 : index
    %c0_19 = arith.constant 0 : index
    %56 = vector.load %arg2[%c216, %c0_19] : memref<408x128xf32, #tpu.memory_space<vmem>>, vector<32x128xf32>
    %c241 = arith.constant 241 : index
    %c0_20 = arith.constant 0 : index
    %57 = vector.load %arg2[%c241, %c0_20] : memref<408x128xf32, #tpu.memory_space<vmem>>, vector<1x128xf32>
    %58 = vector.extract_strided_slice %55 {offsets = [0, 0], sizes = [8, 32], strides = [1, 1]} : vector<8x128xf32> to vector<8x32xf32>
    %cst_21 = arith.constant dense<0.000000e+00> : vector<8x128xf32>
    %59 = tpu.matmul %58, %56, %cst_21 {dimension_numbers = #tpu.dot_dimension_numbers<[1], [0], [0], [1], [0, 0, 1, 1], [], []>} : vector<8x32xf32>, vector<32x128xf32>, vector<8x128xf32> -> vector<8x128xf32>
    %60 = vector.broadcast %57 : vector<1x128xf32> to vector<8x128xf32>
    %61 = arith.addf %59, %60 : vector<8x128xf32>
    %cst_22 = arith.constant 0.000000e+00 : f32
    %62 = vector.broadcast %cst_22 : f32 to vector<8x128xf32>
    %63 = arith.maximumf %61, %62 : vector<8x128xf32>
    %c248 = arith.constant 248 : index
    %c0_23 = arith.constant 0 : index
    %64 = vector.load %arg2[%c248, %c0_23] : memref<408x128xf32, #tpu.memory_space<vmem>>, vector<56x128xf32>
    %c298 = arith.constant 298 : index
    %c0_24 = arith.constant 0 : index
    %65 = vector.load %arg2[%c298, %c0_24] : memref<408x128xf32, #tpu.memory_space<vmem>>, vector<1x128xf32>
    %66 = vector.extract_strided_slice %63 {offsets = [0, 0], sizes = [8, 56], strides = [1, 1]} : vector<8x128xf32> to vector<8x56xf32>
    %cst_25 = arith.constant dense<0.000000e+00> : vector<8x128xf32>
    %67 = tpu.matmul %66, %64, %cst_25 {dimension_numbers = #tpu.dot_dimension_numbers<[1], [0], [0], [1], [0, 0, 1, 1], [], []>} : vector<8x56xf32>, vector<56x128xf32>, vector<8x128xf32> -> vector<8x128xf32>
    %68 = vector.broadcast %65 : vector<1x128xf32> to vector<8x128xf32>
    %69 = arith.addf %67, %68 : vector<8x128xf32>
    %cst_26 = arith.constant 0.000000e+00 : f32
    %70 = vector.broadcast %cst_26 : f32 to vector<8x128xf32>
    %71 = arith.maximumf %69, %70 : vector<8x128xf32>
    %c304 = arith.constant 304 : index
    %c0_27 = arith.constant 0 : index
    %72 = vector.load %arg2[%c304, %c0_27] : memref<408x128xf32, #tpu.memory_space<vmem>>, vector<104x128xf32>
    %c404 = arith.constant 404 : index
    %c0_28 = arith.constant 0 : index
    %73 = vector.load %arg2[%c404, %c0_28] : memref<408x128xf32, #tpu.memory_space<vmem>>, vector<1x128xf32>
    %74 = vector.extract_strided_slice %71 {offsets = [0, 0], sizes = [8, 104], strides = [1, 1]} : vector<8x128xf32> to vector<8x104xf32>
    %cst_29 = arith.constant dense<0.000000e+00> : vector<8x128xf32>
    %75 = tpu.matmul %74, %72, %cst_29 {dimension_numbers = #tpu.dot_dimension_numbers<[1], [0], [0], [1], [0, 0, 1, 1], [], []>} : vector<8x104xf32>, vector<104x128xf32>, vector<8x128xf32> -> vector<8x128xf32>
    %76 = vector.broadcast %73 : vector<1x128xf32> to vector<8x128xf32>
    %77 = arith.addf %75, %76 : vector<8x128xf32>
    %78 = arith.addf %77, %30 : vector<8x128xf32>
    %c0_30 = arith.constant 0 : index
    %c0_31 = arith.constant 0 : index
    %79 = vector.load %arg3[%c0_30, %c0_31] : memref<8x128xf32, #tpu.memory_space<vmem>>, vector<8x128xf32>
    tpu.vector_store %arg3[%c0_30, %c0_31], %78 {strides = array<i32>} : memref<8x128xf32, #tpu.memory_space<vmem>>, vector<8x128xf32>,
    return
  }
  func.func @transform_0(%arg0: i32) -> (i32, i32) {
    %c0_i32 = arith.constant 0 : i32
    %c0_i32_0 = arith.constant 0 : i32
    return %arg0, %c0_i32 : i32, i32
  }
  func.func @transform_1(%arg0: i32) -> (i32, i32) {
    %c0_i32 = arith.constant 0 : i32
    %c0_i32_0 = arith.constant 0 : i32
    %c0_i32_1 = arith.constant 0 : i32
    return %c0_i32, %c0_i32_0 : i32, i32
  }
  func.func @transform_2(%arg0: i32) -> (i32, i32) {
    %c0_i32 = arith.constant 0 : i32
    %c0_i32_0 = arith.constant 0 : i32
    return %arg0, %c0_i32 : i32, i32
  }
}

module attributes {stable_mosaic.version = 11 : i64} {
  func.func @_vae_kernel(%arg0: i32, %arg1: memref<8x128xf32, #tpu.memory_space<vmem>>, %arg2: memref<408x128xf32, #tpu.memory_space<vmem>>, %arg3: memref<8x128xf32, #tpu.memory_space<vmem>>) attributes {dimension_semantics = [#tpu.dimension_semantics<parallel>], iteration_bounds = array<i64: 1>, scalar_prefetch = 0 : i64, scratch_operands = 0 : i64, tpu.core_type = #tpu.core_type<tc>, window_params = [{transform_indices = @transform_0, window_bounds = array<i64: 8, 128>}, {pipeline_mode = #tpu.pipeline_mode<synchronous>, transform_indices = @transform_1, window_bounds = array<i64: 408, 128>}, {transform_indices = @transform_2, window_bounds = array<i64: 8, 128>}]} {
    %c0 = arith.constant 0 : index
    %c0_0 = arith.constant 0 : index
    %0 = vector.load %arg1[%c0, %c0_0] : memref<8x128xf32, #tpu.memory_space<vmem>>, vector<8x128xf32>
    %c0_1 = arith.constant 0 : index
    %c0_2 = arith.constant 0 : index
    %1 = vector.load %arg2[%c0_1, %c0_2] : memref<408x128xf32, #tpu.memory_space<vmem>>, vector<16x128xf32>
    %c10 = arith.constant 10 : index
    %c0_3 = arith.constant 0 : index
    %2 = vector.load %arg2[%c10, %c0_3] : memref<408x128xf32, #tpu.memory_space<vmem>>, vector<1x128xf32>
    %3 = vector.extract_strided_slice %0 {offsets = [0, 0], sizes = [8, 16], strides = [1, 1]} : vector<8x128xf32> to vector<8x16xf32>
    %cst = arith.constant dense<0.000000e+00> : vector<8x128xf32>
    %4 = tpu.matmul %3, %1, %cst {dimension_numbers = #tpu.dot_dimension_numbers<[1], [0], [0], [1], [0, 0, 1, 1], [], []>} : vector<8x16xf32>, vector<16x128xf32>, vector<8x128xf32> -> vector<8x128xf32>
    %5 = vector.broadcast %2 : vector<1x128xf32> to vector<8x128xf32>
    %6 = arith.addf %4, %5 : vector<8x128xf32>
    %cst_4 = arith.constant 0.000000e+00 : f32
    %7 = vector.broadcast %cst_4 : f32 to vector<8x128xf32>
    %8 = arith.maximumf %6, %7 : vector<8x128xf32>
    %c16 = arith.constant 16 : index
    %c0_5 = arith.constant 0 : index
    %9 = vector.load %arg2[%c16, %c0_5] : memref<408x128xf32, #tpu.memory_space<vmem>>, vector<104x128xf32>
    %c116 = arith.constant 116 : index
    %c0_6 = arith.constant 0 : index
    %10 = vector.load %arg2[%c116, %c0_6] : memref<408x128xf32, #tpu.memory_space<vmem>>, vector<1x128xf32>
    %11 = vector.extract_strided_slice %8 {offsets = [0, 0], sizes = [8, 104], strides = [1, 1]} : vector<8x128xf32> to vector<8x104xf32>
    %cst_7 = arith.constant dense<0.000000e+00> : vector<8x128xf32>
    %12 = tpu.matmul %11, %9, %cst_7 {dimension_numbers = #tpu.dot_dimension_numbers<[1], [0], [0], [1], [0, 0, 1, 1], [], []>} : vector<8x104xf32>, vector<104x128xf32>, vector<8x128xf32> -> vector<8x128xf32>
    %13 = vector.broadcast %10 : vector<1x128xf32> to vector<8x128xf32>
    %14 = arith.addf %12, %13 : vector<8x128xf32>
    %cst_8 = arith.constant 0.000000e+00 : f32
    %15 = vector.broadcast %cst_8 : f32 to vector<8x128xf32>
    %16 = arith.maximumf %14, %15 : vector<8x128xf32>
    %c120 = arith.constant 120 : index
    %c0_9 = arith.constant 0 : index
    %17 = vector.load %arg2[%c120, %c0_9] : memref<408x128xf32, #tpu.memory_space<vmem>>, vector<56x128xf32>
    %c170 = arith.constant 170 : index
    %c0_10 = arith.constant 0 : index
    %18 = vector.load %arg2[%c170, %c0_10] : memref<408x128xf32, #tpu.memory_space<vmem>>, vector<1x128xf32>
    %19 = vector.extract_strided_slice %16 {offsets = [0, 0], sizes = [8, 56], strides = [1, 1]} : vector<8x128xf32> to vector<8x56xf32>
    %cst_11 = arith.constant dense<0.000000e+00> : vector<8x128xf32>
    %20 = tpu.matmul %19, %17, %cst_11 {dimension_numbers = #tpu.dot_dimension_numbers<[1], [0], [0], [1], [0, 0, 1, 1], [], []>} : vector<8x56xf32>, vector<56x128xf32>, vector<8x128xf32> -> vector<8x128xf32>
    %21 = vector.broadcast %18 : vector<1x128xf32> to vector<8x128xf32>
    %22 = arith.addf %20, %21 : vector<8x128xf32>
    %cst_12 = arith.constant 0.000000e+00 : f32
    %23 = vector.broadcast %cst_12 : f32 to vector<8x128xf32>
    %24 = arith.maximumf %22, %23 : vector<8x128xf32>
    %c176 = arith.constant 176 : index
    %c0_13 = arith.constant 0 : index
    %25 = vector.load %arg2[%c176, %c0_13] : memref<408x128xf32, #tpu.memory_space<vmem>>, vector<32x128xf32>
    %c201 = arith.constant 201 : index
    %c0_14 = arith.constant 0 : index
    %26 = vector.load %arg2[%c201, %c0_14] : memref<408x128xf32, #tpu.memory_space<vmem>>, vector<1x128xf32>
    %27 = vector.extract_strided_slice %24 {offsets = [0, 0], sizes = [8, 32], strides = [1, 1]} : vector<8x128xf32> to vector<8x32xf32>
    %cst_15 = arith.constant dense<0.000000e+00> : vector<8x128xf32>
    %28 = tpu.matmul %27, %25, %cst_15 {dimension_numbers = #tpu.dot_dimension_numbers<[1], [0], [0], [1], [0, 0, 1, 1], [], []>} : vector<8x32xf32>, vector<32x128xf32>, vector<8x128xf32> -> vector<8x128xf32>
    %29 = vector.broadcast %26 : vector<1x128xf32> to vector<8x128xf32>
    %30 = arith.addf %28, %29 : vector<8x128xf32>
    %31 = vector.extract_strided_slice %30 {offsets = [0, 16], sizes = [8, 2], strides = [1, 1]} : vector<8x128xf32> to vector<8x2xf32>
    %32 = vector.extract_strided_slice %30 {offsets = [0, 18], sizes = [8, 2], strides = [1, 1]} : vector<8x128xf32> to vector<8x2xf32>
    %33 = vector.extract_strided_slice %0 {offsets = [0, 16], sizes = [8, 2], strides = [1, 1]} : vector<8x128xf32> to vector<8x2xf32>
    %cst_16 = arith.constant 5.000000e-01 : f32
    %34 = vector.broadcast %cst_16 : f32 to vector<8x2xf32>
    %35 = arith.mulf %34, %32 : vector<8x2xf32>
    %36 = math.exp %35 : vector<8x2xf32>
    %37 = arith.mulf %33, %36 : vector<8x2xf32>
    %38 = arith.addf %31, %37 : vector<8x2xf32>
    %c208 = arith.constant 208 : index
    %c0_17 = arith.constant 0 : index
    %39 = vector.load %arg2[%c208, %c0_17] : memref<408x128xf32, #tpu.memory_space<vmem>>, vector<8x128xf32>
    %40 = vector.extract_strided_slice %38 {offsets = [0, 0], sizes = [8, 1], strides = [1, 1]} : vector<8x2xf32> to vector<8x1xf32>
    %41 = vector.extract_strided_slice %39 {offsets = [0, 0], sizes = [1, 128], strides = [1, 1]} : vector<8x128xf32> to vector<1x128xf32>
    %42 = vector.broadcast %40 : vector<8x1xf32> to vector<8x128xf32>
    %43 = vector.broadcast %41 : vector<1x128xf32> to vector<8x128xf32>
    %44 = arith.mulf %42, %43 : vector<8x128xf32>
    %45 = vector.extract_strided_slice %38 {offsets = [0, 1], sizes = [8, 1], strides = [1, 1]} : vector<8x2xf32> to vector<8x1xf32>
    %46 = vector.extract_strided_slice %39 {offsets = [1, 0], sizes = [1, 128], strides = [1, 1]} : vector<8x128xf32> to vector<1x128xf32>
    %47 = vector.broadcast %45 : vector<8x1xf32> to vector<8x128xf32>
    %48 = vector.broadcast %46 : vector<1x128xf32> to vector<8x128xf32>
    %49 = arith.mulf %47, %48 : vector<8x128xf32>
    %50 = arith.addf %44, %49 : vector<8x128xf32>
    %51 = vector.extract_strided_slice %39 {offsets = [2, 0], sizes = [1, 128], strides = [1, 1]} : vector<8x128xf32> to vector<1x128xf32>
    %52 = vector.broadcast %51 : vector<1x128xf32> to vector<8x128xf32>
    %53 = arith.addf %50, %52 : vector<8x128xf32>
    %cst_18 = arith.constant 0.000000e+00 : f32
    %54 = vector.broadcast %cst_18 : f32 to vector<8x128xf32>
    %55 = arith.maximumf %53, %54 : vector<8x128xf32>
    %c216 = arith.constant 216 : index
    %c0_19 = arith.constant 0 : index
    %56 = vector.load %arg2[%c216, %c0_19] : memref<408x128xf32, #tpu.memory_space<vmem>>, vector<32x128xf32>
    %c241 = arith.constant 241 : index
    %c0_20 = arith.constant 0 : index
    %57 = vector.load %arg2[%c241, %c0_20] : memref<408x128xf32, #tpu.memory_space<vmem>>, vector<1x128xf32>
    %58 = vector.extract_strided_slice %55 {offsets = [0, 0], sizes = [8, 32], strides = [1, 1]} : vector<8x128xf32> to vector<8x32xf32>
    %cst_21 = arith.constant dense<0.000000e+00> : vector<8x128xf32>
    %59 = tpu.matmul %58, %56, %cst_21 {dimension_numbers = #tpu.dot_dimension_numbers<[1], [0], [0], [1], [0, 0, 1, 1], [], []>} : vector<8x32xf32>, vector<32x128xf32>, vector<8x128xf32> -> vector<8x128xf32>
    %60 = vector.broadcast %57 : vector<1x128xf32> to vector<8x128xf32>
    %61 = arith.addf %59, %60 : vector<8x128xf32>
    %cst_22 = arith.constant 0.000000e+00 : f32
    %62 = vector.broadcast %cst_22 : f32 to vector<8x128xf32>
    %63 = arith.maximumf %61, %62 : vector<8x128xf32>
    %c248 = arith.constant 248 : index
    %c0_23 = arith.constant 0 : index
    %64 = vector.load %arg2[%c248, %c0_23] : memref<408x128xf32, #tpu.memory_space<vmem>>, vector<56x128xf32>
    %c298 = arith.constant 298 : index
    %c0_24 = arith.constant 0 : index
    %65 = vector.load %arg2[%c298, %c0_24] : memref<408x128xf32, #tpu.memory_space<vmem>>, vector<1x128xf32>
    %66 = vector.extract_strided_slice %63 {offsets = [0, 0], sizes = [8, 56], strides = [1, 1]} : vector<8x128xf32> to vector<8x56xf32>
    %cst_25 = arith.constant dense<0.000000e+00> : vector<8x128xf32>
    %67 = tpu.matmul %66, %64, %cst_25 {dimension_numbers = #tpu.dot_dimension_numbers<[1], [0], [0], [1], [0, 0, 1, 1], [], []>} : vector<8x56xf32>, vector<56x128xf32>, vector<8x128xf32> -> vector<8x128xf32>
    %68 = vector.broadcast %65 : vector<1x128xf32> to vector<8x128xf32>
    %69 = arith.addf %67, %68 : vector<8x128xf32>
    %cst_26 = arith.constant 0.000000e+00 : f32
    %70 = vector.broadcast %cst_26 : f32 to vector<8x128xf32>
    %71 = arith.maximumf %69, %70 : vector<8x128xf32>
    %c304 = arith.constant 304 : index
    %c0_27 = arith.constant 0 : index
    %72 = vector.load %arg2[%c304, %c0_27] : memref<408x128xf32, #tpu.memory_space<vmem>>, vector<104x128xf32>
    %c404 = arith.constant 404 : index
    %c0_28 = arith.constant 0 : index
    %73 = vector.load %arg2[%c404, %c0_28] : memref<408x128xf32, #tpu.memory_space<vmem>>, vector<1x128xf32>
    %74 = vector.extract_strided_slice %71 {offsets = [0, 0], sizes = [8, 104], strides = [1, 1]} : vector<8x128xf32> to vector<8x104xf32>
    %cst_29 = arith.constant dense<0.000000e+00> : vector<8x128xf32>
    %75 = tpu.matmul %74, %72, %cst_29 {dimension_numbers = #tpu.dot_dimension_numbers<[1], [0], [0], [1], [0, 0, 1, 1], [], []>} : vector<8x104xf32>, vector<104x128xf32>, vector<8x128xf32> -> vector<8x128xf32>
    %76 = vector.broadcast %73 : vector<1x128xf32> to vector<8x128xf32>
    %77 = arith.addf %75, %76 : vector<8x128xf32>
    %78 = arith.addf %77, %30 : vector<8x128xf32>
    %c0_30 = arith.constant 0 : index
    %c0_31 = arith.constant 0 : index
    %79 = vector.load %arg3[%c0_30, %c0_31] : memref<8x128xf32, #tpu.memory_space<vmem>>, vector<8x128xf32>
    tpu.vector_store %arg3[%c0_30, %c0_31], %78 {strides = array<i32>} : memref<8x128xf32, #tpu.memory_space<vmem>>, vector<8x128xf32>,
    return
  }
  func.func @transform_0(%arg0: i32) -> (i32, i32) {
    %c0_i32 = arith.constant 0 : i32
    %c0_i32_0 = arith.constant 0 : i32
    return %arg0, %c0_i32 : i32, i32
  }
  func.func @transform_1(%arg0: i32) -> (i32, i32) {
    %c0_i32 = arith.constant 0 : i32
    %c0_i32_0 = arith.constant 0 : i32
    %c0_i32_1 = arith.constant 0 : i32
    return %c0_i32, %c0_i32_0 : i32, i32
  }
  func.func @transform_2(%arg0: i32) -> (i32, i32) {
    %c0_i32 = arith.constant 0 : i32
    %c0_i32_0 = arith.constant 0 : i32
    return %arg0, %c0_i32 : i32, i32
  }
}

</mosaic_0001>

<bundles_post_ra>
// kernel: tpu_custom_call.1
= control target key start
LH: loop header
LB: loop body
LE: loop exit
PB: predicated region body
PF: predicated region fallthrough
CT: control target
= control target key end

     0   :  { %7 = vsyncpa [#allocation3], 0  ;;  %s1172_s0 = inlined_call_operand.hbm [shape: f32[8,128], index: 0, kind: input, shape index: {}]   ;;  %s1173_s1 = inlined_call_operand.hbm [shape: f32[408,128], index: 1, kind: input, shape index: {}]   ;;  %s1174_s2 = inlined_call_operand.hbm [shape: f32[8,128], index: 2, kind: output, shape index: {}]  }
   0x1   :  { %8 = vsyncpa [#allocation6], 0 }
   0x2   :  { %9 = vsyncpa [#allocation4], 0  ;;  %s1047_s9 = smov [#allocation2]   ;;  %s1048_s11 = smov [#allocation5]  }
   0x3   :  { %s16_s10 = sshll.u32 %s1047_s9, 4  ;;  %s25_s12 = sshll.u32 %s1048_s11, 4  ;;  %s17_s10 = int_to_ptr.vmem [resolvable:$true] %s16_s10  ;;  %s1073_s12 = int_to_ptr.vmem [resolvable:$true] %s25_s12 }
   0x4   :  { %s975_s15 = scalar_lea.hbm %s1172_s0, 128 }
   0x5   :  { %p976_p0 = scmp.ne.s32.totalorder %s1172_s0, %s975_s15  ;;  %p979_p1 = scmp.lt.u32.totalorder %s975_s15, %s1172_s0 }
   0x7   :  { %p981_p2 = pnand %p979_p1, %p976_p0 }
   0x9   :  { %984 = shalt.err (!%p981_p2)
}
   0xa   :  { %s985_s20 = scalar_lea.vmem %s17_s10, 128  ;;  %p990_p4 = scmp.lt.s32.totalorder %s17_s10, %s17_s10 }
   0xb   :  { %p986_p3 = scmp.ne.s32.totalorder %s17_s10, %s985_s20  ;;  %p991_p5 = scmp.lt.s32.totalorder %s985_s20, %s985_s20 }
   0xd   :  { %p992_p6 = por %p991_p5, %p990_p4 }
   0xf   :  { %p993_p7 = pnand %p992_p6, %p986_p3 }
  0x11   :  { %996 = shalt.err (!%p993_p7)
}
  0x12   :  { %19 = dma.hbm_to_vmem [thread:$0]  %s1172_s0, 128, %s17_s10, [#allocation3]  }
  0x13   :  { %s997_s25 = scalar_lea.hbm %s1173_s1, 6528 }
  0x14   :  { %p998_p8 = scmp.ne.s32.totalorder %s1173_s1, %s997_s25  ;;  %p1001_p9 = scmp.lt.u32.totalorder %s997_s25, %s1173_s1 }
  0x16   :  { %p1003_p10 = pnand %p1001_p9, %p998_p8 }
  0x18   :  { %1006 = shalt.err (!%p1003_p10)
}
  0x19   :  { %s1007_s30 = scalar_lea.vmem %s1073_s12, 6528  ;;  %p1012_p12 = scmp.lt.s32.totalorder %s1073_s12, %s1073_s12 }
  0x1a   :  { %p1008_p11 = scmp.ne.s32.totalorder %s1073_s12, %s1007_s30  ;;  %p1013_p13 = scmp.lt.s32.totalorder %s1007_s30, %s1007_s30 }
  0x1c   :  { %p1014_p0 = por %p1013_p13, %p1012_p12 }
  0x1e   :  { %p1015_p1 = pnand %p1014_p0, %p1008_p11 }
  0x20   :  { %1018 = shalt.err (!%p1015_p1)
}
  0x21   :  { %s1049_s0 = smov 128   ;;  %s1050_s3 = smov 8  }
  0x22   :  { %31 = dma.hbm_to_vmem [thread:$0]  %s1173_s1, 6528, %s1073_s12, [#allocation6], %s1049_s0, %s1049_s0, %s1050_s3  }
  0x23   :  { %1041 = dma.done.wait [#allocation3], 128  }
  0x24   :  { %1042 = vsyncadd [#allocation3], 4294967168 }
  0x25   :  { %1043 = dma.done.wait [#allocation6], 6528  }
  0x26   :  { %1044 = vsyncadd [#allocation6], 4294960768  ;;  %v1051_v0 = vmov 0.0|0.0   ;;  %vm1052_vm0 = vmmov 0   ;;  %v1053_v1 = vmov 0.0   ;;  %v39_v2 = vld [vmem:[#allocation5] sm:$0xff] }
  0x27   :  { %890 = vmatprep.subr.bf16.mxu0 %v1051_v0  ;;  %773 = vmatprep.mubr.msk.f32.mxu0 %vm1052_vm0, %v1053_v1  ;;  %v40_v3 = vld [vmem:[#allocation5 + $0x8] sm:$0xff]  ;;  %v121_v5 = vld [vmem:[#allocation5 + $0x10] sm:$0xff]  ;;  %v122_v6 = vld [vmem:[#allocation5 + $0x18] sm:$0xff]  ;;  %vm46_vm1 = vcmask 130048   ;;  %vm139_vm2 = vcmask 850944   ;;  %vm226_vm3 = vcmask 457728  }
  0x28   :  { %893 = vmatprep.subr.bf16.mxu1 %v1051_v0  ;;  %802 = vmatprep.mubr.msk.f32.mxu1 %vm1052_vm0, %v1053_v1  ;;  %v891_v4 = vpack.c.bf16 %v40_v3, %v39_v2  ;;  %v123_v7 = vld [vmem:[#allocation5 + $0x20] sm:$0xff]  ;;  %v894_v8 = vpack.c.bf16 %v122_v6, %v121_v5  ;;  %v124_v9 = vld [vmem:[#allocation5 + $0x28] sm:$0xff]  ;;  %v1110_v10 = vld [vmem:[#allocation2] sm:$0xff]  ;;  %vm310_vm4 = vcmask 261120   ;;  %v1054_v62 = vmov 17   ;;  %s1056_s1 = smov 126  }
  0x29   :  { %v897_v11 = vpack.c.bf16 %v124_v9, %v123_v7  ;;  %v125_v12 = vld [vmem:[#allocation5 + $0x30] sm:$0xff]  ;;  %v126_v13 = vld [vmem:[#allocation5 + $0x38] sm:$0xff]  ;;  %v127_v15 = vld [vmem:[#allocation5 + $0x40] sm:$0xff]  ;;  %971 = vset.pattern.permute.xlu1 %v1054_v62  ;;  %v1055_v63 = vmov 16   ;;  %s1057_s6 = smov [#allocation7]  }
  0x2a   :  { %892 = vmatpush3.bf16.msra.mxu0 %v891_v4  ;;  %895 = vmatpush3.bf16.msra.mxu1 %v894_v8  ;;  %v900_v14 = vpack.c.bf16 %v126_v13, %v125_v12  ;;  %v128_v16 = vld [vmem:[#allocation5 + $0x48] sm:$0xff]  ;;  %v129_v18 = vld [vmem:[#allocation5 + $0x50] sm:$0xff]  ;;  %v130_v19 = vld [vmem:[#allocation5 + $0x58] sm:$0xff]  ;;  %s688_s7 = sshll.u32 %s1057_s6, 4  ;;  %s689_s7 = int_to_ptr.vmem [resolvable:$true] %s688_s7 }
  0x2b   :  { %911 = vmatprep.subr.bf16.mxu0 %v1051_v0  ;;  %896 = vmatprep.subr.bf16.mxu1 %v1051_v0  ;;  %v903_v17 = vpack.c.bf16 %v128_v16, %v127_v15  ;;  %v906_v20 = vpack.c.bf16 %v130_v19, %v129_v18  ;;  %v131_v21 = vld [vmem:[#allocation5 + $0x60] sm:$0xff]  ;;  %v132_v22 = vld [vmem:[#allocation5 + $0x68] sm:$0xff]  ;;  %v133_v24 = vld [vmem:[#allocation5 + $0x70] sm:$0xff]  ;;  %v399_v18 = vlaneseq  ;;  %s1019_s8 = scalar_lea.vmem %s689_s7, 128  ;;  %p1024_p3 = scmp.lt.s32.totalorder %s689_s7, %s689_s7 }
  0x2c   :  { %v909_v23 = vpack.c.bf16 %v132_v22, %v131_v21  ;;  %v214_v25 = vld [vmem:[#allocation5 + $0x78] sm:$0xff]  ;;  %v215_v26 = vld [vmem:[#allocation5 + $0x80] sm:$0xff]  ;;  %v216_v27 = vld [vmem:[#allocation5 + $0x88] sm:$0xff]  ;;  %970 = vset.pattern.permute.xlu0 %v1055_v63  ;;  %p1020_p2 = scmp.ne.s32.totalorder %s689_s7, %s1019_s8  ;;  %p1025_p4 = scmp.lt.s32.totalorder %s1019_s8, %s1019_s8 }
  0x2d   :  { %774 = vmatmul.mubr.msk.f32.vlgmr.msra.gmra.mrb[0].mxu0 %vm46_vm1, %v1110_v10  ;;  %v912_v28 = vpack.c.bf16 %v215_v26, %v214_v25  ;;  %v217_v29 = vld [vmem:[#allocation5 + $0x90] sm:$0xff]  ;;  %v698_v31 = vld [vmem:[#allocation5 + $0xa] ss:$0 sm:$0xff]  ;;  %v218_v36 = vld [vmem:[#allocation5 + $0x98] sm:$0xff]  ;;  %v400_v19 = vshrl.u32 %v399_v18, 7 }
  0x2e   :  { %819 = vmatprep.mubr.msk.f32.mxu0 %vm1052_vm0, %v1053_v1  ;;  %898 = vmatpush3.bf16.msra.mxu1 %v897_v11  ;;  %v915_v30 = vpack.c.bf16 %v217_v29, %v216_v27  ;;  %v219_v37 = vld [vmem:[#allocation5 + $0xa0] sm:$0xff]  ;;  %v220_v39 = vld [vmem:[#allocation5 + $0xa8] sm:$0xff]  ;;  %v301_v40 = vld [vmem:[#allocation5 + $0xb0] sm:$0xff]  ;;  %p1026_p5 = por %p1025_p4, %p1024_p3 }
  0x2f   :  { %899 = vmatprep.subr.bf16.mxu1 %v1051_v0  ;;  %913 = vmatpush3.bf16.msra.mxu0 %v912_v28  ;;  %v918_v38 = vpack.c.bf16 %v219_v37, %v218_v36  ;;  %v302_v41 = vld [vmem:[#allocation5 + $0xb8] sm:$0xff]  ;;  %v700_v43 = vld [vmem:[#allocation5 + $0x74] ss:$0 sm:$0xff]  ;;  %v303_v48 = vld [vmem:[#allocation5 + $0xc0] sm:$0xff]  ;;  %v401_v21 = vsub.s32 0, %v400_v19  ;;  %v416_v25 = vsub.s32 2, %v400_v19 }
  0x30   :  { %914 = vmatprep.subr.bf16.mxu0 %v1051_v0  ;;  %v921_v42 = vpack.c.bf16 %v302_v41, %v301_v40  ;;  %v304_v49 = vld [vmem:[#allocation5 + $0xc8] sm:$0xff]  ;;  %v420_v6 = vld [vmem:[#allocation5 + $0xd8] sm:$0xff]  ;;  %v421_v7 = vld [vmem:[#allocation5 + $0xe0] sm:$0xff]  ;;  %p1027_p6 = pnand %p1026_p5, %p1020_p2 }
  0x31   :  { %v924_v50 = vpack.c.bf16 %v304_v49, %v303_v48  ;;  %v702_v51 = vld [vmem:[#allocation5 + $0xaa] ss:$0 sm:$0xff]  ;;  %v704_v56 = vld [vmem:[#allocation5 + $0xc9] ss:$0 sm:$0xff]  ;;  %v927_v8 = vpack.c.bf16 %v421_v7, %v420_v6  ;;  %v423_v11 = vld [vmem:[#allocation5 + $0xf0] sm:$0xff] }
  0x32   :  { %901 = vmatpush3.bf16.msra.mxu1 %v900_v14  ;;  %v422_v9 = vld [vmem:[#allocation5 + $0xe8] sm:$0xff]  ;;  %v503_v13 = vld [vmem:[#allocation5 + $0xf8] sm:$0xff]  ;;  %v504_v14 = vld [vmem:[#allocation5 + $0x100] sm:$0xff] }
  0x33   :  { %902 = vmatprep.subr.bf16.mxu1 %v1051_v0  ;;  %916 = vmatpush3.bf16.msra.mxu0 %v915_v30  ;;  %v930_v12 = vpack.c.bf16 %v423_v11, %v422_v9  ;;  %v933_v15 = vpack.c.bf16 %v504_v14, %v503_v13  ;;  %v506_v16 = vld [vmem:[#allocation5 + $0x110] sm:$0xff]  ;;  %v509_v37 = vld [vmem:[#allocation5 + $0x128] sm:$0xff]  ;;  %v591_v40 = vld [vmem:[#allocation5 + $0x140] sm:$0xff] }
  0x34   :  { %917 = vmatprep.subr.bf16.mxu0 %v1051_v0  ;;  %v393_v22 = vld [vmem:[#allocation5 + $0xd0] sm:$0xff]  ;;  %v596_v48 = vld [vmem:[#allocation5 + $0x168] sm:$0xff] }
  0x35   :  { %v417_v29 = vrot.slane %v393_v22, %v416_v25  ;;  %v708_v63 = vld [vmem:[#allocation5 + $0x12a] ss:$0 sm:$0xff] }
  0x36   :  { %904 = vmatpush3.bf16.msra.mxu1 %v903_v17 }
  0x37   :  { %905 = vmatprep.subr.bf16.mxu1 %v1051_v0  ;;  %919 = vmatpush3.bf16.msra.mxu0 %v918_v38  ;;  %v589_v38 = vld [vmem:[#allocation5 + $0x130] sm:$0xff] }
  0x38   :  { %817 = vmatprep.subr.mxu0 %v1053_v1 }
  0x3a   :  { %907 = vmatpush3.bf16.msra.mxu1 %v906_v20  ;;  %v410_v20 = vsub.s32 1, %v400_v19 }
  0x3b   :  { %908 = vmatprep.subr.bf16.mxu1 %v1051_v0  ;;  %818 = vmatpush3.msra.mxu0 %v220_v39  ;;  %v590_v39 = vld [vmem:[#allocation5 + $0x138] sm:$0xff] }
  0x3c   :  { %926 = vmatprep.subr.bf16.mxu0 %v1051_v0  ;;  %v942_v41 = vpack.c.bf16 %v590_v39, %v589_v38 }
  0x3e   :  { %910 = vmatpush3.bf16.msra.mxu1 %v909_v23  ;;  %v411_v23 = vrot.slane %v393_v22, %v410_v20 }
  0x3f   :  { %800 = vmatprep.subr.mxu1 %v1053_v1 }
  0x42   :  { %801 = vmatpush3.msra.mxu1 %v133_v24  ;;  %v402_v24 = vrot.slane %v393_v22, %v401_v21 }
  0x43   :  { %920 = vmatprep.subr.bf16.mxu1 %v1051_v0 }
 0x100   :  { %v116_v32 = vpop.f32.mrb[0].mxu0 }
 0x101   :  { %v117_v33 = vadd.f32 %v698_v31, %v116_v32  ;;  %v775_v34 = vpop.f32.mrb[1].mxu0 }
 0x102   :  { %v507_v34 = vld [vmem:[#allocation5 + $0x118] sm:$0xff] }
 0x103   :  { %v120_v35 = vmax.f32 %v117_v33, 0.0 }
 0x105   :  { %803 = vmatmul.mubr.msk.f32.vlgmr.msra.gmra.mrb[0].mxu1 %vm139_vm2, %v120_v35  ;;  %v508_v35 = vld [vmem:[#allocation5 + $0x120] sm:$0xff] }
 0x106   :  { %830 = vmatprep.mubr.msk.f32.mxu1 %vm1052_vm0, %v1053_v1  ;;  %922 = vmatpush3.bf16.msra.mxu1 %v921_v42  ;;  %v939_v36 = vpack.c.bf16 %v508_v35, %v507_v34  ;;  %v592_v42 = vld [vmem:[#allocation5 + $0x148] sm:$0xff] }
 0x107   :  { %923 = vmatprep.subr.bf16.mxu1 %v1051_v0 }
 0x10a   :  { %925 = vmatpush3.bf16.msra.mxu1 %v924_v50  ;;  %v597_v50 = vld [vmem:[#allocation5 + $0x170] sm:$0xff] }
 0x10b   :  { %932 = vmatprep.subr.bf16.mxu1 %v1051_v0 }
 0x1d8   :  { %v209_v44 = vpop.f32.mrb[0].mxu1 }
 0x1d9   :  { %v210_v45 = vadd.f32 %v700_v43, %v209_v44  ;;  %v804_v46 = vpop.f32.mrb[1].mxu1  ;;  %v945_v43 = vpack.c.bf16 %v592_v42, %v591_v40  ;;  %v593_v44 = vld [vmem:[#allocation5 + $0x150] sm:$0xff] }
 0x1db   :  { %v213_v47 = vmax.f32 %v210_v45, 0.0  ;;  %v594_v45 = vld [vmem:[#allocation5 + $0x158] sm:$0xff] }
 0x1dc   :  { %v948_v46 = vpack.c.bf16 %v594_v45, %v593_v44 }
 0x1dd   :  { %820 = vmatmul.mubr.msk.f32.vlgmr.msra.gmra.mrb[2].mxu0 %vm226_vm3, %v213_v47  ;;  %v595_v47 = vld [vmem:[#allocation5 + $0x160] sm:$0xff] }
 0x1de   :  { %841 = vmatprep.mubr.msk.f32.mxu0 %vm1052_vm0, %v1053_v1  ;;  %928 = vmatpush3.bf16.msra.mxu0 %v927_v8  ;;  %v951_v49 = vpack.c.bf16 %v596_v48, %v595_v47 }
 0x1df   :  { %929 = vmatprep.subr.bf16.mxu0 %v1051_v0 }
 0x1e2   :  { %931 = vmatpush3.bf16.msra.mxu0 %v930_v12 }
 0x1e3   :  { %941 = vmatprep.subr.bf16.mxu0 %v1051_v0 }
 0x2b0   :  { %v296_v52 = vpop.f32.mrb[2].mxu0 }
 0x2b1   :  { %v297_v53 = vadd.f32 %v702_v51, %v296_v52  ;;  %v821_v54 = vpop.f32.mrb[3].mxu0  ;;  %v598_v51 = vld [vmem:[#allocation5 + $0x178] sm:$0xff] }
 0x2b2   :  { %v954_v52 = vpack.c.bf16 %v598_v51, %v597_v50 }
 0x2b3   :  { %v300_v55 = vmax.f32 %v297_v53, 0.0  ;;  %v706_v53 = vld [vmem:[#allocation5 + $0xf1] ss:$0 sm:$0xff] }
 0x2b5   :  { %831 = vmatmul.mubr.msk.f32.vlgmr.msra.gmra.mrb[2].mxu1 %vm310_vm4, %v300_v55 }
 0x2b6   :  { %858 = vmatprep.mubr.msk.f32.mxu1 %vm1052_vm0, %v1053_v1  ;;  %934 = vmatpush3.bf16.msra.mxu1 %v933_v15 }
 0x2b7   :  { %935 = vmatprep.subr.bf16.mxu1 %v1051_v0 }
 0x388   :  { %v380_v57 = vpop.f32.mrb[2].mxu1 }
 0x389   :  { %v1138_v58 = vadd.f32 %v704_v56, %v380_v57  ;;  %v832_v59 = vpop.f32.mrb[3].mxu1 }
 0x38a   :  { %v599_v59 = vld [vmem:[#allocation5 + $0x180] sm:$0xff] }
 0x38b   :  { %v384_v60 = vmul.f32 0.5, %v1138_v58 }
 0x38d   :  { %v385_v61 = vmul.f32 1.442695, %v384_v60  ;;  %v600_v60 = vld [vmem:[#allocation5 + $0x188] sm:$0xff] }
 0x38f   :  { %973 = vpow2.f32 %v385_v61  ;;  %v957_v61 = vpack.c.bf16 %v600_v60, %v599_v59 }
 0x399   :  { %v974_v2 = vpop.eup %973 }
 0x39a   :  { %388 = vrot.lane.b32.xlu0 %v974_v2, %s1056_s1 }
 0x40c   :  { %v389_v3 = vpop.permute.xlu0 %388 }
 0x40d   :  { %v391_v4 = vmul.f32 %v389_v3, %v1110_v10  ;;  %v505_v10 = vld [vmem:[#allocation5 + $0x108] sm:$0xff] }
 0x40e   :  { %v936_v17 = vpack.c.bf16 %v506_v16, %v505_v10 }
 0x40f   :  { %v392_v5 = vadd.f32 %v391_v4, %v1138_v58 }
 0x410   :  { %937 = vmatpush3.bf16.msra.mxu1 %v936_v17 }
 0x411   :  { %405 = vperm.xlu1 %971, %v392_v5   ;;  %396 = vperm.xlu0 %970, %v392_v5   ;;  %v710_v5 = vld [vmem:[#allocation5 + $0x194] ss:$0 sm:$0xff] }
 0x412   :  { %938 = vmatprep.subr.bf16.mxu1 %v1051_v0 }
 0x414   :  { %940 = vmatpush3.bf16.msra.mxu1 %v939_v36 }
 0x415   :  { %972 = vset.pattern.permute.xlu0 %v1054_v62  ;;  %856 = vmatprep.subr.mxu1 %v1053_v1  ;;  %v601_v62 = vld [vmem:[#allocation5 + $0x190] sm:$0xff] }
 0x418   :  { %857 = vmatpush3.msra.mxu1 %v509_v37 }
 0x490   :  { %v406_v26 = vpop.permute.xlu1 %405  ;;  %v397_v27 = vpop.permute.xlu0 %396 }
 0x491   :  { %v412_v28 = vmul.f32 %v411_v23, %v406_v26  ;;  %v403_v30 = vmul.f32 %v402_v24, %v397_v27 }
 0x493   :  { %v413_v31 = vadd.f32 %v412_v28, %v403_v30 }
 0x495   :  { %v418_v32 = vadd.f32 %v417_v29, %v413_v31 }
 0x497   :  { %v419_v33 = vmax.f32 %v418_v32, 0.0 }
 0x499   :  { %842 = vmatmul.mubr.msk.f32.vlgmr.msra.gmra.mrb[4].mxu0 %vm310_vm4, %v419_v33 }
 0x49a   :  { %887 = vmatprep.mubr.msk.f32.mxu0 %vm1052_vm0, %v1053_v1  ;;  %943 = vmatpush3.bf16.msra.mxu0 %v942_v41 }
 0x49b   :  { %944 = vmatprep.subr.bf16.mxu0 %v1051_v0 }
 0x49e   :  { %946 = vmatpush3.bf16.msra.mxu0 %v945_v43 }
 0x49f   :  { %947 = vmatprep.subr.bf16.mxu0 %v1051_v0 }
 0x4a2   :  { %949 = vmatpush3.bf16.msra.mxu0 %v948_v46 }
 0x4a3   :  { %950 = vmatprep.subr.bf16.mxu0 %v1051_v0 }
 0x4a6   :  { %952 = vmatpush3.bf16.msra.mxu0 %v951_v49 }
 0x4a7   :  { %953 = vmatprep.subr.bf16.mxu0 %v1051_v0 }
 0x4aa   :  { %955 = vmatpush3.bf16.msra.mxu0 %v954_v52 }
 0x4ab   :  { %956 = vmatprep.subr.bf16.mxu0 %v1051_v0 }
 0x4ae   :  { %958 = vmatpush3.bf16.msra.mxu0 %v957_v61 }
 0x4af   :  { %885 = vmatprep.subr.mxu0 %v1053_v1 }
 0x4b2   :  { %886 = vmatpush3.msra.mxu0 %v601_v62 }
 0x56c   :  { %v498_v54 = vpop.f32.mrb[4].mxu0 }
 0x56d   :  { %v499_v55 = vadd.f32 %v706_v53, %v498_v54  ;;  %v843_v56 = vpop.f32.mrb[5].mxu0 }
 0x56f   :  { %v502_v57 = vmax.f32 %v499_v55, 0.0 }
 0x571   :  { %859 = vmatmul.mubr.msk.f32.vlgmr.msra.gmra.mrb[4].mxu1 %vm226_vm3, %v502_v57 }
 0x644   :  { %v584_v2 = vpop.f32.mrb[4].mxu1 }
 0x645   :  { %v585_v3 = vadd.f32 %v708_v63, %v584_v2  ;;  %v860_v4 = vpop.f32.mrb[5].mxu1 }
 0x647   :  { %v588_v0 = vmax.f32 %v585_v3, 0.0 }
 0x649   :  { %888 = vmatmul.mubr.msk.f32.vlgmr.msra.gmra.mrb[6].mxu0 %vm139_vm2, %v588_v0 }
 0x71c   :  { %v676_v6 = vpop.f32.mrb[6].mxu0 }
 0x71d   :  { %v677_v7 = vadd.f32 %v710_v5, %v676_v6  ;;  %v889_v8 = vpop.f32.mrb[7].mxu0 }
 0x71f   :  { %v680_v9 = vadd.f32 %v677_v7, %v1138_v58 }
 0x721   :  { %681 = vst [vmem:[#allocation7] sm:$0xff] %v680_v9 }
 0x722   :  { %1030 = shalt.err (!%p1027_p6)
}
 0x723   :  { %s1031_s11 = scalar_lea.hbm %s1174_s2, 128 }
 0x724   :  { %p1032_p7 = scmp.ne.s32.totalorder %s1174_s2, %s1031_s11  ;;  %p1035_p8 = scmp.lt.u32.totalorder %s1031_s11, %s1174_s2 }
 0x726   :  { %p1037_p9 = pnand %p1035_p8, %p1032_p7 }
 0x728   :  { %1040 = shalt.err (!%p1037_p9)
}
 0x729   :  { %691 = dma.vmem_to_hbm [thread:$0]  %s689_s7, 128, %s1174_s2, [#allocation4]  }
 0x72a   :  { %1045 = dma.done.wait [#allocation4], 128  }
 0x72b   :  { %1046 = vsyncadd [#allocation4], 4294967168 }
 0x72c   :  { %695 = vsyncpa [#allocation3], 1 }
 0x72d   :  { %696 = vsyncpa [#allocation6], 1 }
 0x72e   :  { %697 = vsyncpa [#allocation4], 1 }

// kernel: tpu_custom_call.1
= control target key start
LH: loop header
LB: loop body
LE: loop exit
PB: predicated region body
PF: predicated region fallthrough
CT: control target
= control target key end

     0   :  { %7 = vsyncpa [#allocation3], 0  ;;  %s1172_s0 = inlined_call_operand.hbm [shape: f32[8,128], index: 0, kind: input, shape index: {}]   ;;  %s1173_s1 = inlined_call_operand.hbm [shape: f32[408,128], index: 1, kind: input, shape index: {}]   ;;  %s1174_s2 = inlined_call_operand.hbm [shape: f32[8,128], index: 2, kind: output, shape index: {}]  }
   0x1   :  { %8 = vsyncpa [#allocation6], 0 }
   0x2   :  { %9 = vsyncpa [#allocation4], 0  ;;  %s1047_s9 = smov [#allocation2]   ;;  %s1048_s11 = smov [#allocation5]  }
   0x3   :  { %s16_s10 = sshll.u32 %s1047_s9, 4  ;;  %s25_s12 = sshll.u32 %s1048_s11, 4  ;;  %s17_s10 = int_to_ptr.vmem [resolvable:$true] %s16_s10  ;;  %s1073_s12 = int_to_ptr.vmem [resolvable:$true] %s25_s12 }
   0x4   :  { %s975_s15 = scalar_lea.hbm %s1172_s0, 128 }
   0x5   :  { %p976_p0 = scmp.ne.s32.totalorder %s1172_s0, %s975_s15  ;;  %p979_p1 = scmp.lt.u32.totalorder %s975_s15, %s1172_s0 }
   0x7   :  { %p981_p2 = pnand %p979_p1, %p976_p0 }
   0x9   :  { %984 = shalt.err (!%p981_p2)
}
   0xa   :  { %s985_s20 = scalar_lea.vmem %s17_s10, 128  ;;  %p990_p4 = scmp.lt.s32.totalorder %s17_s10, %s17_s10 }
   0xb   :  { %p986_p3 = scmp.ne.s32.totalorder %s17_s10, %s985_s20  ;;  %p991_p5 = scmp.lt.s32.totalorder %s985_s20, %s985_s20 }
   0xd   :  { %p992_p6 = por %p991_p5, %p990_p4 }
   0xf   :  { %p993_p7 = pnand %p992_p6, %p986_p3 }
  0x11   :  { %996 = shalt.err (!%p993_p7)
}
  0x12   :  { %19 = dma.hbm_to_vmem [thread:$0]  %s1172_s0, 128, %s17_s10, [#allocation3]  }
  0x13   :  { %s997_s25 = scalar_lea.hbm %s1173_s1, 6528 }
  0x14   :  { %p998_p8 = scmp.ne.s32.totalorder %s1173_s1, %s997_s25  ;;  %p1001_p9 = scmp.lt.u32.totalorder %s997_s25, %s1173_s1 }
  0x16   :  { %p1003_p10 = pnand %p1001_p9, %p998_p8 }
  0x18   :  { %1006 = shalt.err (!%p1003_p10)
}
  0x19   :  { %s1007_s30 = scalar_lea.vmem %s1073_s12, 6528  ;;  %p1012_p12 = scmp.lt.s32.totalorder %s1073_s12, %s1073_s12 }
  0x1a   :  { %p1008_p11 = scmp.ne.s32.totalorder %s1073_s12, %s1007_s30  ;;  %p1013_p13 = scmp.lt.s32.totalorder %s1007_s30, %s1007_s30 }
  0x1c   :  { %p1014_p0 = por %p1013_p13, %p1012_p12 }
  0x1e   :  { %p1015_p1 = pnand %p1014_p0, %p1008_p11 }
  0x20   :  { %1018 = shalt.err (!%p1015_p1)
}
  0x21   :  { %s1049_s0 = smov 128   ;;  %s1050_s3 = smov 8  }
  0x22   :  { %31 = dma.hbm_to_vmem [thread:$0]  %s1173_s1, 6528, %s1073_s12, [#allocation6], %s1049_s0, %s1049_s0, %s1050_s3  }
  0x23   :  { %1041 = dma.done.wait [#allocation3], 128  }
  0x24   :  { %1042 = vsyncadd [#allocation3], 4294967168 }
  0x25   :  { %1043 = dma.done.wait [#allocation6], 6528  }
  0x26   :  { %1044 = vsyncadd [#allocation6], 4294960768  ;;  %v1051_v0 = vmov 0.0|0.0   ;;  %vm1052_vm0 = vmmov 0   ;;  %v1053_v1 = vmov 0.0   ;;  %v39_v2 = vld [vmem:[#allocation5] sm:$0xff] }
  0x27   :  { %890 = vmatprep.subr.bf16.mxu0 %v1051_v0  ;;  %773 = vmatprep.mubr.msk.f32.mxu0 %vm1052_vm0, %v1053_v1  ;;  %v40_v3 = vld [vmem:[#allocation5 + $0x8] sm:$0xff]  ;;  %v121_v5 = vld [vmem:[#allocation5 + $0x10] sm:$0xff]  ;;  %v122_v6 = vld [vmem:[#allocation5 + $0x18] sm:$0xff]  ;;  %vm46_vm1 = vcmask 130048   ;;  %vm139_vm2 = vcmask 850944   ;;  %vm226_vm3 = vcmask 457728  }
  0x28   :  { %893 = vmatprep.subr.bf16.mxu1 %v1051_v0  ;;  %802 = vmatprep.mubr.msk.f32.mxu1 %vm1052_vm0, %v1053_v1  ;;  %v891_v4 = vpack.c.bf16 %v40_v3, %v39_v2  ;;  %v123_v7 = vld [vmem:[#allocation5 + $0x20] sm:$0xff]  ;;  %v894_v8 = vpack.c.bf16 %v122_v6, %v121_v5  ;;  %v124_v9 = vld [vmem:[#allocation5 + $0x28] sm:$0xff]  ;;  %v1110_v10 = vld [vmem:[#allocation2] sm:$0xff]  ;;  %vm310_vm4 = vcmask 261120   ;;  %v1054_v62 = vmov 17   ;;  %s1056_s1 = smov 126  }
  0x29   :  { %v897_v11 = vpack.c.bf16 %v124_v9, %v123_v7  ;;  %v125_v12 = vld [vmem:[#allocation5 + $0x30] sm:$0xff]  ;;  %v126_v13 = vld [vmem:[#allocation5 + $0x38] sm:$0xff]  ;;  %v127_v15 = vld [vmem:[#allocation5 + $0x40] sm:$0xff]  ;;  %971 = vset.pattern.permute.xlu1 %v1054_v62  ;;  %v1055_v63 = vmov 16   ;;  %s1057_s6 = smov [#allocation7]  }
  0x2a   :  { %892 = vmatpush3.bf16.msra.mxu0 %v891_v4  ;;  %895 = vmatpush3.bf16.msra.mxu1 %v894_v8  ;;  %v900_v14 = vpack.c.bf16 %v126_v13, %v125_v12  ;;  %v128_v16 = vld [vmem:[#allocation5 + $0x48] sm:$0xff]  ;;  %v129_v18 = vld [vmem:[#allocation5 + $0x50] sm:$0xff]  ;;  %v130_v19 = vld [vmem:[#allocation5 + $0x58] sm:$0xff]  ;;  %s688_s7 = sshll.u32 %s1057_s6, 4  ;;  %s689_s7 = int_to_ptr.vmem [resolvable:$true] %s688_s7 }
  0x2b   :  { %911 = vmatprep.subr.bf16.mxu0 %v1051_v0  ;;  %896 = vmatprep.subr.bf16.mxu1 %v1051_v0  ;;  %v903_v17 = vpack.c.bf16 %v128_v16, %v127_v15  ;;  %v906_v20 = vpack.c.bf16 %v130_v19, %v129_v18  ;;  %v131_v21 = vld [vmem:[#allocation5 + $0x60] sm:$0xff]  ;;  %v132_v22 = vld [vmem:[#allocation5 + $0x68] sm:$0xff]  ;;  %v133_v24 = vld [vmem:[#allocation5 + $0x70] sm:$0xff]  ;;  %v399_v18 = vlaneseq  ;;  %s1019_s8 = scalar_lea.vmem %s689_s7, 128  ;;  %p1024_p3 = scmp.lt.s32.totalorder %s689_s7, %s689_s7 }
  0x2c   :  { %v909_v23 = vpack.c.bf16 %v132_v22, %v131_v21  ;;  %v214_v25 = vld [vmem:[#allocation5 + $0x78] sm:$0xff]  ;;  %v215_v26 = vld [vmem:[#allocation5 + $0x80] sm:$0xff]  ;;  %v216_v27 = vld [vmem:[#allocation5 + $0x88] sm:$0xff]  ;;  %970 = vset.pattern.permute.xlu0 %v1055_v63  ;;  %p1020_p2 = scmp.ne.s32.totalorder %s689_s7, %s1019_s8  ;;  %p1025_p4 = scmp.lt.s32.totalorder %s1019_s8, %s1019_s8 }
  0x2d   :  { %774 = vmatmul.mubr.msk.f32.vlgmr.msra.gmra.mrb[0].mxu0 %vm46_vm1, %v1110_v10  ;;  %v912_v28 = vpack.c.bf16 %v215_v26, %v214_v25  ;;  %v217_v29 = vld [vmem:[#allocation5 + $0x90] sm:$0xff]  ;;  %v698_v31 = vld [vmem:[#allocation5 + $0xa] ss:$0 sm:$0xff]  ;;  %v218_v36 = vld [vmem:[#allocation5 + $0x98] sm:$0xff]  ;;  %v400_v19 = vshrl.u32 %v399_v18, 7 }
  0x2e   :  { %819 = vmatprep.mubr.msk.f32.mxu0 %vm1052_vm0, %v1053_v1  ;;  %898 = vmatpush3.bf16.msra.mxu1 %v897_v11  ;;  %v915_v30 = vpack.c.bf16 %v217_v29, %v216_v27  ;;  %v219_v37 = vld [vmem:[#allocation5 + $0xa0] sm:$0xff]  ;;  %v220_v39 = vld [vmem:[#allocation5 + $0xa8] sm:$0xff]  ;;  %v301_v40 = vld [vmem:[#allocation5 + $0xb0] sm:$0xff]  ;;  %p1026_p5 = por %p1025_p4, %p1024_p3 }
  0x2f   :  { %899 = vmatprep.subr.bf16.mxu1 %v1051_v0  ;;  %913 = vmatpush3.bf16.msra.mxu0 %v912_v28  ;;  %v918_v38 = vpack.c.bf16 %v219_v37, %v218_v36  ;;  %v302_v41 = vld [vmem:[#allocation5 + $0xb8] sm:$0xff]  ;;  %v700_v43 = vld [vmem:[#allocation5 + $0x74] ss:$0 sm:$0xff]  ;;  %v303_v48 = vld [vmem:[#allocation5 + $0xc0] sm:$0xff]  ;;  %v401_v21 = vsub.s32 0, %v400_v19  ;;  %v416_v25 = vsub.s32 2, %v400_v19 }
  0x30   :  { %914 = vmatprep.subr.bf16.mxu0 %v1051_v0  ;;  %v921_v42 = vpack.c.bf16 %v302_v41, %v301_v40  ;;  %v304_v49 = vld [vmem:[#allocation5 + $0xc8] sm:$0xff]  ;;  %v420_v6 = vld [vmem:[#allocation5 + $0xd8] sm:$0xff]  ;;  %v421_v7 = vld [vmem:[#allocation5 + $0xe0] sm:$0xff]  ;;  %p1027_p6 = pnand %p1026_p5, %p1020_p2 }
  0x31   :  { %v924_v50 = vpack.c.bf16 %v304_v49, %v303_v48  ;;  %v702_v51 = vld [vmem:[#allocation5 + $0xaa] ss:$0 sm:$0xff]  ;;  %v704_v56 = vld [vmem:[#allocation5 + $0xc9] ss:$0 sm:$0xff]  ;;  %v927_v8 = vpack.c.bf16 %v421_v7, %v420_v6  ;;  %v423_v11 = vld [vmem:[#allocation5 + $0xf0] sm:$0xff] }
  0x32   :  { %901 = vmatpush3.bf16.msra.mxu1 %v900_v14  ;;  %v422_v9 = vld [vmem:[#allocation5 + $0xe8] sm:$0xff]  ;;  %v503_v13 = vld [vmem:[#allocation5 + $0xf8] sm:$0xff]  ;;  %v504_v14 = vld [vmem:[#allocation5 + $0x100] sm:$0xff] }
  0x33   :  { %902 = vmatprep.subr.bf16.mxu1 %v1051_v0  ;;  %916 = vmatpush3.bf16.msra.mxu0 %v915_v30  ;;  %v930_v12 = vpack.c.bf16 %v423_v11, %v422_v9  ;;  %v933_v15 = vpack.c.bf16 %v504_v14, %v503_v13  ;;  %v506_v16 = vld [vmem:[#allocation5 + $0x110] sm:$0xff]  ;;  %v509_v37 = vld [vmem:[#allocation5 + $0x128] sm:$0xff]  ;;  %v591_v40 = vld [vmem:[#allocation5 + $0x140] sm:$0xff] }
  0x34   :  { %917 = vmatprep.subr.bf16.mxu0 %v1051_v0  ;;  %v393_v22 = vld [vmem:[#allocation5 + $0xd0] sm:$0xff]  ;;  %v596_v48 = vld [vmem:[#allocation5 + $0x168] sm:$0xff] }
  0x35   :  { %v417_v29 = vrot.slane %v393_v22, %v416_v25  ;;  %v708_v63 = vld [vmem:[#allocation5 + $0x12a] ss:$0 sm:$0xff] }
  0x36   :  { %904 = vmatpush3.bf16.msra.mxu1 %v903_v17 }
  0x37   :  { %905 = vmatprep.subr.bf16.mxu1 %v1051_v0  ;;  %919 = vmatpush3.bf16.msra.mxu0 %v918_v38  ;;  %v589_v38 = vld [vmem:[#allocation5 + $0x130] sm:$0xff] }
  0x38   :  { %817 = vmatprep.subr.mxu0 %v1053_v1 }
  0x3a   :  { %907 = vmatpush3.bf16.msra.mxu1 %v906_v20  ;;  %v410_v20 = vsub.s32 1, %v400_v19 }
  0x3b   :  { %908 = vmatprep.subr.bf16.mxu1 %v1051_v0  ;;  %818 = vmatpush3.msra.mxu0 %v220_v39  ;;  %v590_v39 = vld [vmem:[#allocation5 + $0x138] sm:$0xff] }
  0x3c   :  { %926 = vmatprep.subr.bf16.mxu0 %v1051_v0  ;;  %v942_v41 = vpack.c.bf16 %v590_v39, %v589_v38 }
  0x3e   :  { %910 = vmatpush3.bf16.msra.mxu1 %v909_v23  ;;  %v411_v23 = vrot.slane %v393_v22, %v410_v20 }
  0x3f   :  { %800 = vmatprep.subr.mxu1 %v1053_v1 }
  0x42   :  { %801 = vmatpush3.msra.mxu1 %v133_v24  ;;  %v402_v24 = vrot.slane %v393_v22, %v401_v21 }
  0x43   :  { %920 = vmatprep.subr.bf16.mxu1 %v1051_v0 }
 0x100   :  { %v116_v32 = vpop.f32.mrb[0].mxu0 }
 0x101   :  { %v117_v33 = vadd.f32 %v698_v31, %v116_v32  ;;  %v775_v34 = vpop.f32.mrb[1].mxu0 }
 0x102   :  { %v507_v34 = vld [vmem:[#allocation5 + $0x118] sm:$0xff] }
 0x103   :  { %v120_v35 = vmax.f32 %v117_v33, 0.0 }
 0x105   :  { %803 = vmatmul.mubr.msk.f32.vlgmr.msra.gmra.mrb[0].mxu1 %vm139_vm2, %v120_v35  ;;  %v508_v35 = vld [vmem:[#allocation5 + $0x120] sm:$0xff] }
 0x106   :  { %830 = vmatprep.mubr.msk.f32.mxu1 %vm1052_vm0, %v1053_v1  ;;  %922 = vmatpush3.bf16.msra.mxu1 %v921_v42  ;;  %v939_v36 = vpack.c.bf16 %v508_v35, %v507_v34  ;;  %v592_v42 = vld [vmem:[#allocation5 + $0x148] sm:$0xff] }
 0x107   :  { %923 = vmatprep.subr.bf16.mxu1 %v1051_v0 }
 0x10a   :  { %925 = vmatpush3.bf16.msra.mxu1 %v924_v50  ;;  %v597_v50 = vld [vmem:[#allocation5 + $0x170] sm:$0xff] }
 0x10b   :  { %932 = vmatprep.subr.bf16.mxu1 %v1051_v0 }
 0x1d8   :  { %v209_v44 = vpop.f32.mrb[0].mxu1 }
 0x1d9   :  { %v210_v45 = vadd.f32 %v700_v43, %v209_v44  ;;  %v804_v46 = vpop.f32.mrb[1].mxu1  ;;  %v945_v43 = vpack.c.bf16 %v592_v42, %v591_v40  ;;  %v593_v44 = vld [vmem:[#allocation5 + $0x150] sm:$0xff] }
 0x1db   :  { %v213_v47 = vmax.f32 %v210_v45, 0.0  ;;  %v594_v45 = vld [vmem:[#allocation5 + $0x158] sm:$0xff] }
 0x1dc   :  { %v948_v46 = vpack.c.bf16 %v594_v45, %v593_v44 }
 0x1dd   :  { %820 = vmatmul.mubr.msk.f32.vlgmr.msra.gmra.mrb[2].mxu0 %vm226_vm3, %v213_v47  ;;  %v595_v47 = vld [vmem:[#allocation5 + $0x160] sm:$0xff] }
 0x1de   :  { %841 = vmatprep.mubr.msk.f32.mxu0 %vm1052_vm0, %v1053_v1  ;;  %928 = vmatpush3.bf16.msra.mxu0 %v927_v8  ;;  %v951_v49 = vpack.c.bf16 %v596_v48, %v595_v47 }
 0x1df   :  { %929 = vmatprep.subr.bf16.mxu0 %v1051_v0 }
 0x1e2   :  { %931 = vmatpush3.bf16.msra.mxu0 %v930_v12 }
 0x1e3   :  { %941 = vmatprep.subr.bf16.mxu0 %v1051_v0 }
 0x2b0   :  { %v296_v52 = vpop.f32.mrb[2].mxu0 }
 0x2b1   :  { %v297_v53 = vadd.f32 %v702_v51, %v296_v52  ;;  %v821_v54 = vpop.f32.mrb[3].mxu0  ;;  %v598_v51 = vld [vmem:[#allocation5 + $0x178] sm:$0xff] }
 0x2b2   :  { %v954_v52 = vpack.c.bf16 %v598_v51, %v597_v50 }
 0x2b3   :  { %v300_v55 = vmax.f32 %v297_v53, 0.0  ;;  %v706_v53 = vld [vmem:[#allocation5 + $0xf1] ss:$0 sm:$0xff] }
 0x2b5   :  { %831 = vmatmul.mubr.msk.f32.vlgmr.msra.gmra.mrb[2].mxu1 %vm310_vm4, %v300_v55 }
 0x2b6   :  { %858 = vmatprep.mubr.msk.f32.mxu1 %vm1052_vm0, %v1053_v1  ;;  %934 = vmatpush3.bf16.msra.mxu1 %v933_v15 }
 0x2b7   :  { %935 = vmatprep.subr.bf16.mxu1 %v1051_v0 }
 0x388   :  { %v380_v57 = vpop.f32.mrb[2].mxu1 }
 0x389   :  { %v1138_v58 = vadd.f32 %v704_v56, %v380_v57  ;;  %v832_v59 = vpop.f32.mrb[3].mxu1 }
 0x38a   :  { %v599_v59 = vld [vmem:[#allocation5 + $0x180] sm:$0xff] }
 0x38b   :  { %v384_v60 = vmul.f32 0.5, %v1138_v58 }
 0x38d   :  { %v385_v61 = vmul.f32 1.442695, %v384_v60  ;;  %v600_v60 = vld [vmem:[#allocation5 + $0x188] sm:$0xff] }
 0x38f   :  { %973 = vpow2.f32 %v385_v61  ;;  %v957_v61 = vpack.c.bf16 %v600_v60, %v599_v59 }
 0x399   :  { %v974_v2 = vpop.eup %973 }
 0x39a   :  { %388 = vrot.lane.b32.xlu0 %v974_v2, %s1056_s1 }
 0x40c   :  { %v389_v3 = vpop.permute.xlu0 %388 }
 0x40d   :  { %v391_v4 = vmul.f32 %v389_v3, %v1110_v10  ;;  %v505_v10 = vld [vmem:[#allocation5 + $0x108] sm:$0xff] }
 0x40e   :  { %v936_v17 = vpack.c.bf16 %v506_v16, %v505_v10 }
 0x40f   :  { %v392_v5 = vadd.f32 %v391_v4, %v1138_v58 }
 0x410   :  { %937 = vmatpush3.bf16.msra.mxu1 %v936_v17 }
 0x411   :  { %405 = vperm.xlu1 %971, %v392_v5   ;;  %396 = vperm.xlu0 %970, %v392_v5   ;;  %v710_v5 = vld [vmem:[#allocation5 + $0x194] ss:$0 sm:$0xff] }
 0x412   :  { %938 = vmatprep.subr.bf16.mxu1 %v1051_v0 }
 0x414   :  { %940 = vmatpush3.bf16.msra.mxu1 %v939_v36 }
 0x415   :  { %972 = vset.pattern.permute.xlu0 %v1054_v62  ;;  %856 = vmatprep.subr.mxu1 %v1053_v1  ;;  %v601_v62 = vld [vmem:[#allocation5 + $0x190] sm:$0xff] }
 0x418   :  { %857 = vmatpush3.msra.mxu1 %v509_v37 }
 0x490   :  { %v406_v26 = vpop.permute.xlu1 %405  ;;  %v397_v27 = vpop.permute.xlu0 %396 }
 0x491   :  { %v412_v28 = vmul.f32 %v411_v23, %v406_v26  ;;  %v403_v30 = vmul.f32 %v402_v24, %v397_v27 }
 0x493   :  { %v413_v31 = vadd.f32 %v412_v28, %v403_v30 }
 0x495   :  { %v418_v32 = vadd.f32 %v417_v29, %v413_v31 }
 0x497   :  { %v419_v33 = vmax.f32 %v418_v32, 0.0 }
 0x499   :  { %842 = vmatmul.mubr.msk.f32.vlgmr.msra.gmra.mrb[4].mxu0 %vm310_vm4, %v419_v33 }
 0x49a   :  { %887 = vmatprep.mubr.msk.f32.mxu0 %vm1052_vm0, %v1053_v1  ;;  %943 = vmatpush3.bf16.msra.mxu0 %v942_v41 }
 0x49b   :  { %944 = vmatprep.subr.bf16.mxu0 %v1051_v0 }
 0x49e   :  { %946 = vmatpush3.bf16.msra.mxu0 %v945_v43 }
 0x49f   :  { %947 = vmatprep.subr.bf16.mxu0 %v1051_v0 }
 0x4a2   :  { %949 = vmatpush3.bf16.msra.mxu0 %v948_v46 }
 0x4a3   :  { %950 = vmatprep.subr.bf16.mxu0 %v1051_v0 }
 0x4a6   :  { %952 = vmatpush3.bf16.msra.mxu0 %v951_v49 }
 0x4a7   :  { %953 = vmatprep.subr.bf16.mxu0 %v1051_v0 }
 0x4aa   :  { %955 = vmatpush3.bf16.msra.mxu0 %v954_v52 }
 0x4ab   :  { %956 = vmatprep.subr.bf16.mxu0 %v1051_v0 }
 0x4ae   :  { %958 = vmatpush3.bf16.msra.mxu0 %v957_v61 }
 0x4af   :  { %885 = vmatprep.subr.mxu0 %v1053_v1 }
 0x4b2   :  { %886 = vmatpush3.msra.mxu0 %v601_v62 }
 0x56c   :  { %v498_v54 = vpop.f32.mrb[4].mxu0 }
 0x56d   :  { %v499_v55 = vadd.f32 %v706_v53, %v498_v54  ;;  %v843_v56 = vpop.f32.mrb[5].mxu0 }
 0x56f   :  { %v502_v57 = vmax.f32 %v499_v55, 0.0 }
 0x571   :  { %859 = vmatmul.mubr.msk.f32.vlgmr.msra.gmra.mrb[4].mxu1 %vm226_vm3, %v502_v57 }
 0x644   :  { %v584_v2 = vpop.f32.mrb[4].mxu1 }
 0x645   :  { %v585_v3 = vadd.f32 %v708_v63, %v584_v2  ;;  %v860_v4 = vpop.f32.mrb[5].mxu1 }
 0x647   :  { %v588_v0 = vmax.f32 %v585_v3, 0.0 }
 0x649   :  { %888 = vmatmul.mubr.msk.f32.vlgmr.msra.gmra.mrb[6].mxu0 %vm139_vm2, %v588_v0 }
 0x71c   :  { %v676_v6 = vpop.f32.mrb[6].mxu0 }
 0x71d   :  { %v677_v7 = vadd.f32 %v710_v5, %v676_v6  ;;  %v889_v8 = vpop.f32.mrb[7].mxu0 }
 0x71f   :  { %v680_v9 = vadd.f32 %v677_v7, %v1138_v58 }
 0x721   :  { %681 = vst [vmem:[#allocation7] sm:$0xff] %v680_v9 }
 0x722   :  { %1030 = shalt.err (!%p1027_p6)
}
 0x723   :  { %s1031_s11 = scalar_lea.hbm %s1174_s2, 128 }
 0x724   :  { %p1032_p7 = scmp.ne.s32.totalorder %s1174_s2, %s1031_s11  ;;  %p1035_p8 = scmp.lt.u32.totalorder %s1031_s11, %s1174_s2 }
 0x726   :  { %p1037_p9 = pnand %p1035_p8, %p1032_p7 }
 0x728   :  { %1040 = shalt.err (!%p1037_p9)
}
 0x729   :  { %691 = dma.vmem_to_hbm [thread:$0]  %s689_s7, 128, %s1174_s2, [#allocation4]  }
 0x72a   :  { %1045 = dma.done.wait [#allocation4], 128  }
 0x72b   :  { %1046 = vsyncadd [#allocation4], 4294967168 }
 0x72c   :  { %695 = vsyncpa [#allocation3], 1 }
 0x72d   :  { %696 = vsyncpa [#allocation6], 1 }
 0x72e   :  { %697 = vsyncpa [#allocation4], 1 }

</bundles_post_ra>
